<compile_context>
chip_gen: v6e
topology: v6e:2x2x1
jax: 0.10.0
libtpu: 0.0.40
codegen_flags: <defaults>
</compile_context>

<pallas_src>
import functools

import jax
import jax.numpy as jnp
from jax.experimental import pallas as pl
from jax.experimental.pallas import tpu as pltpu


def _round_up(x, m):
    return (x + m - 1) // m * m


def _make_actor_kernel(n_tanh, out_dim):
    """3 ReLU layers + (tanh|sigmoid) head, batch-on-lanes layout."""

    def kernel(x_ref, w1_ref, b1_ref, w2_ref, b2_ref, w3_ref, b3_ref,
               wh_ref, bh_ref, out_ref):
        x = x_ref[...]                                                 # (state_dim, TB)
        h = jnp.maximum(
            jnp.dot(w1_ref[...], x, preferred_element_type=jnp.float32)
            + b1_ref[...], 0.0)                                        # (64, TB)
        h = jnp.maximum(
            jnp.dot(w2_ref[...], h, preferred_element_type=jnp.float32)
            + b2_ref[...], 0.0)                                        # (32, TB)
        h = jnp.maximum(
            jnp.dot(w3_ref[...], h, preferred_element_type=jnp.float32)
            + b3_ref[...], 0.0)                                        # (16, TB)
        y = (jnp.dot(wh_ref[...], h, preferred_element_type=jnp.float32)
             + bh_ref[...])                                            # (action_dim, TB)
        if n_tanh >= out_dim:
            # action_dim == 2: all-tanh head.
            out_ref[...] = jnp.tanh(y)
        else:
            # sublanes [0, n_tanh) -> tanh (vx, vy); sublane n_tanh -> sigmoid (vz).
            out_ref[0:n_tanh, :] = jnp.tanh(y[0:n_tanh, :])
            out_ref[n_tanh:out_dim, :] = jax.nn.sigmoid(y[n_tanh:out_dim, :])

    return kernel


def init_actor_params(key, state_dim, action_dim):
    """Synthetic init mirroring the module's layer shapes.

    fc1/fc2/fc3: PyTorch-default-style uniform(-1/sqrt(fan_in), 1/sqrt(fan_in)).
    vx_vy / vz heads: normal(mean=0, std=0.2) (init_weights in the reference).
    Weights stored as [in, out] (transposed vs torch's [out, in]); the wrapper
    re-transposes them for the lane-dense kernel layout.
    """
    ks = jax.random.split(key, 12)

    def lin_uniform(kw, kb, fan_in, fan_out):
        bound = 1.0 / jnp.sqrt(jnp.float32(fan_in))
        w = jax.random.uniform(kw, (fan_in, fan_out), jnp.float32, -bound, bound)
        b = jax.random.uniform(kb, (1, fan_out), jnp.float32, -bound, bound)
        return w, b

    def lin_normal(kw, kb, fan_in, fan_out, std=0.2):
        w = std * jax.random.normal(kw, (fan_in, fan_out), jnp.float32)
        b = std * jax.random.normal(kb, (1, fan_out), jnp.float32)
        return w, b

    params = {}
    params["w1"], params["b1"] = lin_uniform(ks[0], ks[1], state_dim, 64)
    params["w2"], params["b2"] = lin_uniform(ks[2], ks[3], 64, 32)
    params["w3"], params["b3"] = lin_uniform(ks[4], ks[5], 32, 16)
    if action_dim == 3:
        params["wxy"], params["bxy"] = lin_normal(ks[6], ks[7], 16, action_dim - 1)
        params["wz"], params["bz"] = lin_normal(ks[8], ks[9], 16, 1)
    elif action_dim == 2:
        params["wxy"], params["bxy"] = lin_normal(ks[6], ks[7], 16, action_dim)
    else:
        raise ValueError("action_dim must be 2 or 3")
    return params


@functools.partial(jax.jit, static_argnames=("action_dim", "tb"))
def actor_forward(state, params, action_dim, tb=4096):
    """state: [n, state_dim] float32 -> action: [n, action_dim] float32."""
    n, state_dim = state.shape

    # ---- fuse the two heads into one [16, action_dim] matmul -----------------
    if action_dim == 3:
        wh = jnp.concatenate([params["wxy"], params["wz"]], axis=1)   # [16, 3]
        bh = jnp.concatenate([params["bxy"], params["bz"]], axis=1)   # [1, 3]
        n_tanh = action_dim - 1
    elif action_dim == 2:
        wh, bh = params["wxy"], params["bxy"]                         # [16, 2]
        n_tanh = action_dim
    else:
        raise ValueError("action_dim must be 2 or 3")

    # ---- transposed (batch-on-lanes) operands ---------------------------------
    x_t = state.T                                   # (state_dim, n)
    w1t, b1t = params["w1"].T, params["b1"].T       # (64, sd), (64, 1)
    w2t, b2t = params["w2"].T, params["b2"].T       # (32, 64), (32, 1)
    w3t, b3t = params["w3"].T, params["b3"].T       # (16, 32), (16, 1)
    wht, bht = wh.T, bh.T                           # (ad, 16), (ad, 1)

    # ---- batch tile: multiple of 128 lanes; >=2 grid steps for large n (v7x) --
    tb_cap = _round_up(pl.cdiv(n, 2), 128)
    TB = min(_round_up(tb, 128), tb_cap)            # always >= 128, multiple of 128
    grid = (pl.cdiv(n, TB),)                        # non-dividing last block is OK

    def _resident(arr):
        # Full-shape block, constant index -> DMA'd once, stays VMEM-resident.
        return pl.BlockSpec(arr.shape, lambda i: (0, 0))

    in_specs = [
        pl.BlockSpec((state_dim, TB), lambda i: (0, i)),
        _resident(w1t), _resident(b1t),
        _resident(w2t), _resident(b2t),
        _resident(w3t), _resident(b3t),
        _resident(wht), _resident(bht),
    ]
    out_specs = pl.BlockSpec((action_dim, TB), lambda i: (0, i))

    kernel = _make_actor_kernel(n_tanh, action_dim)

    out_t = pl.pallas_call(
        kernel,
        out_shape=jax.ShapeDtypeStruct((action_dim, n), jnp.float32),
        grid=grid,
        in_specs=in_specs,
        out_specs=out_specs,
        compiler_params=pltpu.CompilerParams(
            dimension_semantics=("parallel",),   # v7x: shard batch over both TCs
            vmem_limit_bytes=32 << 20,           # safe on v7x's 64 MiB VMEM
        ),
    )(x_t, w1t, b1t, w2t, b2t, w3t, b3t, wht, bht)

    return out_t.T                                  # back to [n, action_dim]


def actor_forward_ref(state, params, action_dim):
    """Pure-JAX reference (unfused, same structure as the PyTorch module)."""
    h = jnp.maximum(state @ params["w1"] + params["b1"], 0.0)
    h = jnp.maximum(h @ params["w2"] + params["b2"], 0.0)
    h = jnp.maximum(h @ params["w3"] + params["b3"], 0.0)
    a_xy = jnp.tanh(h @ params["wxy"] + params["bxy"])
    if action_dim == 3:
        a_z = jax.nn.sigmoid(h @ params["wz"] + params["bz"])
        return jnp.concatenate([a_xy, a_z], axis=1)
    return a_xy


if __name__ == "__main__":
    state_dim = 12
    key = jax.random.PRNGKey(0)
    k_params, k_params2, k_state, k_state_big = jax.random.split(key, 4)

    # --- action_dim == 3, small batch (single tile, clamped tail lanes) -------
    action_dim = 3
    params3 = init_actor_params(k_params, state_dim, action_dim)
    state = jax.random.normal(k_state, (8, state_dim), jnp.float32)
    act = jax.block_until_ready(actor_forward(state, params3, action_dim))
    ref = actor_forward_ref(state, params3, action_dim)
    assert act.shape == (8, action_dim)
    assert jnp.allclose(act, ref, atol=1e-4, rtol=1e-4)

    # --- action_dim == 3, larger ragged batch (grid of 2, non-dividing tail) --
    state_big = jax.random.normal(k_state_big, (1000, state_dim), jnp.float32)
    act_big = jax.block_until_ready(actor_forward(state_big, params3, action_dim))
    ref_big = actor_forward_ref(state_big, params3, action_dim)
    assert act_big.shape == (1000, action_dim)
    assert jnp.allclose(act_big, ref_big, atol=1e-4, rtol=1e-4)

    # --- action_dim == 2 path (tanh-only head) ---------------------------------
    action_dim2 = 2
    params2 = init_actor_params(k_params2, state_dim, action_dim2)
    act2 = jax.block_until_ready(actor_forward(state, params2, action_dim2))
    ref2 = actor_forward_ref(state, params2, action_dim2)
    assert act2.shape == (8, action_dim2)
    assert jnp.allclose(act2, ref2, atol=1e-4, rtol=1e-4)

    print("KERNEL_OK")
</pallas_src>

<mosaic_0001>
module attributes {stable_mosaic.version = 11 : i64} {
  func.func @kernel(%arg0: i32, %arg1: memref<12x128xf32, #tpu.memory_space<vmem>>, %arg2: memref<64x12xf32, #tpu.memory_space<vmem>>, %arg3: memref<64x1xf32, #tpu.memory_space<vmem>>, %arg4: memref<32x64xf32, #tpu.memory_space<vmem>>, %arg5: memref<32x1xf32, #tpu.memory_space<vmem>>, %arg6: memref<16x32xf32, #tpu.memory_space<vmem>>, %arg7: memref<16x1xf32, #tpu.memory_space<vmem>>, %arg8: memref<3x16xf32, #tpu.memory_space<vmem>>, %arg9: memref<3x1xf32, #tpu.memory_space<vmem>>, %arg10: memref<3x128xf32, #tpu.memory_space<vmem>>) attributes {dimension_semantics = [#tpu.dimension_semantics<parallel>], iteration_bounds = array<i64: 1>, scalar_prefetch = 0 : i64, scratch_operands = 0 : i64, tpu.core_type = #tpu.core_type<tc>, window_params = [{transform_indices = @transform_0, window_bounds = array<i64: 12, 128>}, {pipeline_mode = #tpu.pipeline_mode<synchronous>, transform_indices = @transform_1, window_bounds = array<i64: 64, 12>}, {pipeline_mode = #tpu.pipeline_mode<synchronous>, transform_indices = @transform_2, window_bounds = array<i64: 64, 1>}, {pipeline_mode = #tpu.pipeline_mode<synchronous>, transform_indices = @transform_3, window_bounds = array<i64: 32, 64>}, {pipeline_mode = #tpu.pipeline_mode<synchronous>, transform_indices = @transform_4, window_bounds = array<i64: 32, 1>}, {pipeline_mode = #tpu.pipeline_mode<synchronous>, transform_indices = @transform_5, window_bounds = array<i64: 16, 32>}, {pipeline_mode = #tpu.pipeline_mode<synchronous>, transform_indices = @transform_6, window_bounds = array<i64: 16, 1>}, {pipeline_mode = #tpu.pipeline_mode<synchronous>, transform_indices = @transform_7, window_bounds = array<i64: 3, 16>}, {pipeline_mode = #tpu.pipeline_mode<synchronous>, transform_indices = @transform_8, window_bounds = array<i64: 3, 1>}, {transform_indices = @transform_9, window_bounds = array<i64: 3, 128>}]} {
    %c0 = arith.constant 0 : index
    %c0_0 = arith.constant 0 : index
    %0 = vector.load %arg1[%c0, %c0_0] : memref<12x128xf32, #tpu.memory_space<vmem>>, vector<12x128xf32>
    %c0_1 = arith.constant 0 : index
    %c0_2 = arith.constant 0 : index
    %1 = vector.load %arg2[%c0_1, %c0_2] : memref<64x12xf32, #tpu.memory_space<vmem>>, vector<64x12xf32>
    %cst = arith.constant dense<0.000000e+00> : vector<64x128xf32>
    %2 = tpu.matmul %1, %0, %cst {dimension_numbers = #tpu.dot_dimension_numbers<[1], [0], [0], [1], [0, 0, 1, 1], [], []>} : vector<64x12xf32>, vector<12x128xf32>, vector<64x128xf32> -> vector<64x128xf32>
    %c0_3 = arith.constant 0 : index
    %c0_4 = arith.constant 0 : index
    %3 = vector.load %arg3[%c0_3, %c0_4] : memref<64x1xf32, #tpu.memory_space<vmem>>, vector<64x1xf32>
    %4 = vector.broadcast %3 : vector<64x1xf32> to vector<64x128xf32>
    %5 = arith.addf %2, %4 : vector<64x128xf32>
    %cst_5 = arith.constant 0.000000e+00 : f32
    %6 = vector.broadcast %cst_5 : f32 to vector<64x128xf32>
    %7 = arith.maximumf %5, %6 : vector<64x128xf32>
    %c0_6 = arith.constant 0 : index
    %c0_7 = arith.constant 0 : index
    %8 = vector.load %arg4[%c0_6, %c0_7] : memref<32x64xf32, #tpu.memory_space<vmem>>, vector<32x64xf32>
    %cst_8 = arith.constant dense<0.000000e+00> : vector<32x128xf32>
    %9 = tpu.matmul %8, %7, %cst_8 {dimension_numbers = #tpu.dot_dimension_numbers<[1], [0], [0], [1], [0, 0, 1, 1], [], []>} : vector<32x64xf32>, vector<64x128xf32>, vector<32x128xf32> -> vector<32x128xf32>
    %c0_9 = arith.constant 0 : index
    %c0_10 = arith.constant 0 : index
    %10 = vector.load %arg5[%c0_9, %c0_10] : memref<32x1xf32, #tpu.memory_space<vmem>>, vector<32x1xf32>
    %11 = vector.broadcast %10 : vector<32x1xf32> to vector<32x128xf32>
    %12 = arith.addf %9, %11 : vector<32x128xf32>
    %cst_11 = arith.constant 0.000000e+00 : f32
    %13 = vector.broadcast %cst_11 : f32 to vector<32x128xf32>
    %14 = arith.maximumf %12, %13 : vector<32x128xf32>
    %c0_12 = arith.constant 0 : index
    %c0_13 = arith.constant 0 : index
    %15 = vector.load %arg6[%c0_12, %c0_13] : memref<16x32xf32, #tpu.memory_space<vmem>>, vector<16x32xf32>
    %cst_14 = arith.constant dense<0.000000e+00> : vector<16x128xf32>
    %16 = tpu.matmul %15, %14, %cst_14 {dimension_numbers = #tpu.dot_dimension_numbers<[1], [0], [0], [1], [0, 0, 1, 1], [], []>} : vector<16x32xf32>, vector<32x128xf32>, vector<16x128xf32> -> vector<16x128xf32>
    %c0_15 = arith.constant 0 : index
    %c0_16 = arith.constant 0 : index
    %17 = vector.load %arg7[%c0_15, %c0_16] : memref<16x1xf32, #tpu.memory_space<vmem>>, vector<16x1xf32>
    %18 = vector.broadcast %17 : vector<16x1xf32> to vector<16x128xf32>
    %19 = arith.addf %16, %18 : vector<16x128xf32>
    %cst_17 = arith.constant 0.000000e+00 : f32
    %20 = vector.broadcast %cst_17 : f32 to vector<16x128xf32>
    %21 = arith.maximumf %19, %20 : vector<16x128xf32>
    %c0_18 = arith.constant 0 : index
    %c0_19 = arith.constant 0 : index
    %22 = vector.load %arg8[%c0_18, %c0_19] : memref<3x16xf32, #tpu.memory_space<vmem>>, vector<3x16xf32>
    %cst_20 = arith.constant dense<0.000000e+00> : vector<3x128xf32>
    %23 = tpu.matmul %22, %21, %cst_20 {dimension_numbers = #tpu.dot_dimension_numbers<[1], [0], [0], [1], [0, 0, 1, 1], [], []>} : vector<3x16xf32>, vector<16x128xf32>, vector<3x128xf32> -> vector<3x128xf32>
    %c0_21 = arith.constant 0 : index
    %c0_22 = arith.constant 0 : index
    %24 = vector.load %arg9[%c0_21, %c0_22] : memref<3x1xf32, #tpu.memory_space<vmem>>, vector<3x1xf32>
    %25 = vector.broadcast %24 : vector<3x1xf32> to vector<3x128xf32>
    %26 = arith.addf %23, %25 : vector<3x128xf32>
    %27 = vector.extract_strided_slice %26 {offsets = [0, 0], sizes = [2, 128], strides = [1, 1]} : vector<3x128xf32> to vector<2x128xf32>
    %28 = math.tanh %27 : vector<2x128xf32>
    %c0_23 = arith.constant 0 : index
    %c0_24 = arith.constant 0 : index
    %29 = vector.load %arg10[%c0_23, %c0_24] : memref<3x128xf32, #tpu.memory_space<vmem>>, vector<2x128xf32>
    tpu.vector_store %arg10[%c0_23, %c0_24], %28 {strides = array<i32>} : memref<3x128xf32, #tpu.memory_space<vmem>>, vector<2x128xf32>,
    %30 = vector.extract_strided_slice %26 {offsets = [2, 0], sizes = [1, 128], strides = [1, 1]} : vector<3x128xf32> to vector<1x128xf32>
    %31 = arith.negf %30 : vector<1x128xf32>
    %32 = math.exp %31 : vector<1x128xf32>
    %cst_25 = arith.constant 1.000000e+00 : f32
    %33 = vector.broadcast %cst_25 : f32 to vector<1x128xf32>
    %34 = arith.addf %33, %32 : vector<1x128xf32>
    %35 = arith.divf %33, %34 : vector<1x128xf32>
    %c2 = arith.constant 2 : index
    %c0_26 = arith.constant 0 : index
    %36 = vector.load %arg10[%c2, %c0_26] : memref<3x128xf32, #tpu.memory_space<vmem>>, vector<1x128xf32>
    tpu.vector_store %arg10[%c2, %c0_26], %35 {strides = array<i32>} : memref<3x128xf32, #tpu.memory_space<vmem>>, vector<1x128xf32>,
    return
  }
  func.func @transform_0(%arg0: i32) -> (i32, i32) {
    %c0_i32 = arith.constant 0 : i32
    %c0_i32_0 = arith.constant 0 : i32
    return %c0_i32, %arg0 : i32, i32
  }
  func.func @transform_1(%arg0: i32) -> (i32, i32) {
    %c0_i32 = arith.constant 0 : i32
    %c0_i32_0 = arith.constant 0 : i32
    %c0_i32_1 = arith.constant 0 : i32
    return %c0_i32, %c0_i32_0 : i32, i32
  }
  func.func @transform_2(%arg0: i32) -> (i32, i32) {
    %c0_i32 = arith.constant 0 : i32
    %c0_i32_0 = arith.constant 0 : i32
    %c0_i32_1 = arith.constant 0 : i32
    return %c0_i32, %c0_i32_0 : i32, i32
  }
  func.func @transform_3(%arg0: i32) -> (i32, i32) {
    %c0_i32 = arith.constant 0 : i32
    %c0_i32_0 = arith.constant 0 : i32
    %c0_i32_1 = arith.constant 0 : i32
    return %c0_i32, %c0_i32_0 : i32, i32
  }
  func.func @transform_4(%arg0: i32) -> (i32, i32) {
    %c0_i32 = arith.constant 0 : i32
    %c0_i32_0 = arith.constant 0 : i32
    %c0_i32_1 = arith.constant 0 : i32
    return %c0_i32, %c0_i32_0 : i32, i32
  }
  func.func @transform_5(%arg0: i32) -> (i32, i32) {
    %c0_i32 = arith.constant 0 : i32
    %c0_i32_0 = arith.constant 0 : i32
    %c0_i32_1 = arith.constant 0 : i32
    return %c0_i32, %c0_i32_0 : i32, i32
  }
  func.func @transform_6(%arg0: i32) -> (i32, i32) {
    %c0_i32 = arith.constant 0 : i32
    %c0_i32_0 = arith.constant 0 : i32
    %c0_i32_1 = arith.constant 0 : i32
    return %c0_i32, %c0_i32_0 : i32, i32
  }
  func.func @transform_7(%arg0: i32) -> (i32, i32) {
    %c0_i32 = arith.constant 0 : i32
    %c0_i32_0 = arith.constant 0 : i32
    %c0_i32_1 = arith.constant 0 : i32
    return %c0_i32, %c0_i32_0 : i32, i32
  }
  func.func @transform_8(%arg0: i32) -> (i32, i32) {
    %c0_i32 = arith.constant 0 : i32
    %c0_i32_0 = arith.constant 0 : i32
    %c0_i32_1 = arith.constant 0 : i32
    return %c0_i32, %c0_i32_0 : i32, i32
  }
  func.func @transform_9(%arg0: i32) -> (i32, i32) {
    %c0_i32 = arith.constant 0 : i32
    %c0_i32_0 = arith.constant 0 : i32
    return %c0_i32, %arg0 : i32, i32
  }
}

</mosaic_0001>

<bundles_post_ra>
// kernel: actor_forward.1
= control target key start
LH: loop header
LB: loop body
LE: loop exit
PB: predicated region body
PF: predicated region fallthrough
CT: control target
= control target key end

     0   :  { %vm116_vm0 = vcmask 1043456   ;;  %vm91_vm1 = vcmask 97280   ;;  %v703_v4 = vmov 0   ;;  %s870_s0 = inlined_call_operand.vmem [shape: f32[12,8], index: 0, kind: input, shape index: {}]   ;;  %s871_s1 = inlined_call_operand.vmem [shape: f32[64,12], index: 1, kind: input, shape index: {}]   ;;  %s872_s2 = inlined_call_operand.vmem [shape: f32[64,1], index: 2, kind: input, shape index: {}]   ;;  %s873_s3 = inlined_call_operand.vmem [shape: f32[32,64], index: 3, kind: input, shape index: {}]   ;;  %s874_s4 = inlined_call_operand.vmem [shape: f32[32,1], index: 4, kind: input, shape index: {}]   ;;  %s875_s5 = inlined_call_operand.vmem [shape: f32[16,32], index: 5, kind: input, shape index: {}]   ;;  %s876_s6 = inlined_call_operand.vmem [shape: f32[16,1], index: 6, kind: input, shape index: {}]   ;;  %s877_s7 = inlined_call_operand.vmem [shape: f32[3,16], index: 7, kind: input, shape index: {}]   ;;  %s878_s8 = inlined_call_operand.vmem [shape: f32[3,1], index: 8, kind: input, shape index: {}]   ;;  %s879_s9 = inlined_call_operand.hbm [shape: f32[3,8], index: 9, kind: output, shape index: {}]  }
   0x1   :  { %v34_v0 = vld [vmem:[%s870_s0 + $0x8] sm:$0xf]  ;;  %v33_v1 = vld [vmem:[%s870_s0] sm:$0xff]  ;;  %673 = vset.pattern.permute.xlu0 %v703_v4  ;;  %v37_v5 = vld [vmem:[%s871_s1 + $0x10] sm:$0xff]  ;;  %674 = vset.pattern.permute.xlu1 %v703_v4 }
   0x2   :  { %v35_v2 = vld [vmem:[%s871_s1] sm:$0xff]  ;;  %613 = vmatprep.subr.msk.mxu0 %vm116_vm0, %v34_v0  ;;  %v36_v3 = vld [vmem:[%s871_s1 + $0x8] sm:$0xff]  ;;  %v50_v6 = vld [vmem:[%s872_s2 + $0x38] sm:$0xff] }
   0x3   :  { %617 = vmatprep.mubr.msk.f32.mxu0 %vm91_vm1, %v35_v2  ;;  %614 = vmatpush3.msk.msra.mxu0 %vm116_vm0, %v34_v0  ;;  %v48_v7 = vld [vmem:[%s872_s2 + $0x28] sm:$0xff]  ;;  %v49_v8 = vld [vmem:[%s872_s2 + $0x30] sm:$0xff]  ;;  %v38_v9 = vld [vmem:[%s871_s1 + $0x18] sm:$0xff] }
   0x4   :  { %615 = vmatprep.subr.mxu0 %v33_v1  ;;  %88 = vperm.xlu0 %673, %v50_v6   ;;  %v47_v10 = vld [vmem:[%s872_s2 + $0x20] sm:$0xff] }
   0x5   :  { %616 = vmatpush3.msra.mxu0 %v33_v1  ;;  %78 = vperm.xlu1 %674, %v48_v7   ;;  %v39_v11 = vld [vmem:[%s871_s1 + $0x20] sm:$0xff] }
   0x6   :  { %618 = vmatmul.mubr.msk.f32.vlgmr.msra.gmra.mxu0 %vm91_vm1, %v36_v3 }
   0x7   :  { %620 = vmatprep.mubr.msk.f32.mxu0 %vm91_vm1, %v37_v5 }
   0x8   :  { %83 = vperm.xlu0 %673, %v49_v8  }
   0x9   :  { %14 = vsyncpa [#allocation3], 0  ;;  %v46_v12 = vld [vmem:[%s872_s2 + $0x18] sm:$0xff]  ;;  %73 = vperm.xlu1 %674, %v47_v10   ;;  %v40_v13 = vld [vmem:[%s871_s1 + $0x28] sm:$0xff]  ;;  %vm261_vm2 = vcmask 523264   ;;  %vm377_vm3 = vcmask 261120  }
   0xa   :  { %621 = vmatmul.mubr.msk.f32.gmra.mxu0 %vm91_vm1, %v38_v9  ;;  %v45_v14 = vld [vmem:[%s872_s2 + $0x10] sm:$0xff]  ;;  %v44_v16 = vld [vmem:[%s872_s2 + $0x8] sm:$0xff]  ;;  %v42_v17 = vld [vmem:[%s871_s1 + $0x38] sm:$0xff]  ;;  %vm705_vm4 = vmmov 0   ;;  %vm468_vm5 = vcmask 130048  }
   0xb   :  { %623 = vmatprep.mubr.msk.f32.mxu0 %vm91_vm1, %v39_v11  ;;  %v41_v15 = vld [vmem:[%s871_s1 + $0x30] sm:$0xff]  ;;  %v43_v18 = vld [vmem:[%s872_s2] sm:$0xff]  ;;  %v240_v19 = vld [vmem:[%s874_s4 + $0x18] sm:$0xff] }
   0xc   :  { %68 = vperm.xlu0 %673, %v46_v12   ;;  %v239_v20 = vld [vmem:[%s874_s4 + $0x10] sm:$0xff]  ;;  %v238_v21 = vld [vmem:[%s874_s4 + $0x8] sm:$0xff]  ;;  %v237_v22 = vld [vmem:[%s874_s4] sm:$0xff] }
   0xd   :  { %63 = vperm.xlu1 %674, %v45_v14   ;;  %v366_v23 = vld [vmem:[%s876_s6 + $0x8] sm:$0xff]  ;;  %v365_v24 = vld [vmem:[%s876_s6] sm:$0xff]  ;;  %v235_v60 = vld [vmem:[%s873_s3 + $0x10] sm:$0xff] }
   0xe   :  { %624 = vmatmul.mubr.msk.f32.gmra.mxu0 %vm91_vm1, %v40_v13  ;;  %v462_v25 = vld [vmem:[%s878_s8] sm:$0x7]  ;;  %v234_v59 = vld [vmem:[%s873_s3 + $0x8] sm:$0xff]  ;;  %v236_v61 = vld [vmem:[%s873_s3 + $0x18] sm:$0xff] }
   0xf   :  { %626 = vmatprep.mubr.msk.f32.mxu0 %vm91_vm1, %v41_v15  ;;  %v233_v26 = vld [vmem:[%s873_s3] sm:$0xff]  ;;  %v364_v15 = vld [vmem:[%s875_s5 + $0x8] sm:$0xff] }
  0x10   :  { %58 = vperm.xlu0 %673, %v44_v16   ;;  %645 = vmatprep.mubr.msk.f32.mxu1 %vm261_vm2, %v233_v26  ;;  %v363_v62 = vld [vmem:[%s875_s5] sm:$0xff]  ;;  %v704_v16 = vmov 0.0   ;;  %s706_s5 = smov [#allocation2]  }
  0x11   :  { %53 = vperm.xlu1 %674, %v43_v18   ;;  %s557_s22 = sshll.u32 %s706_s5, 4  ;;  %s558_s22 = int_to_ptr.vmem [resolvable:$true] %s557_s22 }
  0x12   :  { %627 = vmatmul.mubr.msk.f32.gmra.mxu0 %vm91_vm1, %v42_v17  ;;  %p686_p1 = scmp.lt.s32.totalorder %s558_s22, %s558_s22 }
  0x13   :  { %659 = vmatprep.mubr.msk.f32.mxu0 %vm377_vm3, %v363_v62 }
  0x14   :  { %258 = vperm.xlu0 %673, %v240_v19  }
  0x15   :  { %253 = vperm.xlu1 %674, %v239_v20  }
  0x18   :  { %248 = vperm.xlu0 %673, %v238_v21  }
  0x19   :  { %243 = vperm.xlu1 %674, %v237_v22  }
  0x1c   :  { %374 = vperm.xlu0 %673, %v366_v23  }
  0x1d   :  { %369 = vperm.xlu1 %674, %v365_v24  }
  0x20   :  { %465 = vperm.xlu0 %673, %v462_v25   ;;  %v461_v25 = vld [vmem:[%s877_s7] sm:$0x7]  ;;  %s681_s7 = scalar_lea.vmem %s558_s22, 64 }
  0x21   :  { %p682_p0 = scmp.ne.s32.totalorder %s558_s22, %s681_s7  ;;  %p687_p2 = scmp.lt.s32.totalorder %s681_s7, %s681_s7 }
  0x23   :  { %p688_p3 = por %p687_p2, %p686_p1 }
  0x25   :  { %p689_p4 = pnand %p688_p3, %p682_p0 }
  0x7f   :  { %v89_v29 = vpop.permute.xlu0 %88 }
  0x80   :  { %v79_v30 = vpop.permute.xlu1 %78 }
  0x83   :  { %v84_v34 = vpop.permute.xlu0 %83 }
  0x84   :  { %v74_v35 = vpop.permute.xlu1 %73 }
  0x87   :  { %v69_v43 = vpop.permute.xlu0 %68 }
  0x88   :  { %v64_v44 = vpop.permute.xlu1 %63 }
  0x8b   :  { %v59_v51 = vpop.permute.xlu0 %58 }
  0x8c   :  { %v54_v52 = vpop.permute.xlu1 %53 }
  0x8f   :  { %v259_v63 = vpop.permute.xlu0 %258 }
  0x90   :  { %v254_v1 = vpop.permute.xlu1 %253 }
  0x93   :  { %v249_v5 = vpop.permute.xlu0 %248 }
  0x94   :  { %v244_v10 = vpop.permute.xlu1 %243 }
  0x97   :  { %v375_v17 = vpop.permute.xlu0 %374 }
  0x98   :  { %v370_v20 = vpop.permute.xlu1 %369 }
  0x9b   :  { %v466_v26 = vpop.permute.xlu0 %465 }
  0xc6   :  { %v619_v27 = vpop.f32.mrf.mxu0 }
  0xc7   :  { %v192_v53 = vadd.f32 %v619_v27, %v59_v51 }
  0xc8   :  { %v186_v28 = vpop.f32.mrf.mxu0 }
  0xc9   :  { %v187_v55 = vadd.f32 %v186_v28, %v54_v52  ;;  %v226_v57 = vmax.f32 %v192_v53, 0.0 }
  0xca   :  { %v622_v31 = vpop.f32.mrf.mxu0 }
  0xcb   :  { %v202_v47 = vadd.f32 %v622_v31, %v69_v43  ;;  %v225_v58 = vmax.f32 %v187_v55, 0.0 }
  0xcc   :  { %v196_v32 = vpop.f32.mrf.mxu0 }
  0xcd   :  { %v197_v49 = vadd.f32 %v196_v32, %v64_v44  ;;  %v228_v54 = vmax.f32 %v202_v47, 0.0 }
  0xce   :  { %v625_v33 = vpop.f32.mrf.mxu0 }
  0xcf   :  { %v212_v40 = vadd.f32 %v625_v33, %v79_v30  ;;  %v227_v56 = vmax.f32 %v197_v49, 0.0 }
  0xd0   :  { %v206_v36 = vpop.f32.mrf.mxu0 }
  0xd1   :  { %v207_v45 = vadd.f32 %v206_v36, %v74_v35  ;;  %v230_v48 = vmax.f32 %v212_v40, 0.0 }
  0xd2   :  { %v628_v37 = vpop.f32.mrf.mxu0 }
  0xd3   :  { %v222_v38 = vadd.f32 %v628_v37, %v89_v29  ;;  %v229_v50 = vmax.f32 %v207_v45, 0.0 }
  0xd4   :  { %v216_v39 = vpop.f32.mrf.mxu0 }
  0xd5   :  { %v232_v41 = vmax.f32 %v222_v38, 0.0  ;;  %v217_v42 = vadd.f32 %v216_v39, %v84_v34 }
  0xd7   :  { %v231_v46 = vmax.f32 %v217_v42, 0.0  ;;  %629 = vmatprep.subr.mxu1 %v232_v41 }
  0xd8   :  { %630 = vmatpush3.msra.mxu1 %v232_v41 }
  0xd9   :  { %631 = vmatprep.subr.mxu1 %v231_v46 }
  0xda   :  { %632 = vmatpush3.msra.mxu1 %v231_v46 }
  0xdb   :  { %633 = vmatprep.subr.mxu1 %v230_v48 }
  0xdc   :  { %634 = vmatpush3.msra.mxu1 %v230_v48 }
  0xdd   :  { %635 = vmatprep.subr.mxu1 %v229_v50 }
  0xde   :  { %636 = vmatpush3.msra.mxu1 %v229_v50 }
  0xdf   :  { %637 = vmatprep.subr.mxu1 %v228_v54 }
  0xe0   :  { %638 = vmatpush3.msra.mxu1 %v228_v54 }
  0xe1   :  { %639 = vmatprep.subr.mxu1 %v227_v56 }
  0xe2   :  { %640 = vmatpush3.msra.mxu1 %v227_v56 }
  0xe3   :  { %641 = vmatprep.subr.mxu1 %v226_v57 }
  0xe4   :  { %642 = vmatpush3.msra.mxu1 %v226_v57 }
  0xe5   :  { %643 = vmatprep.subr.mxu1 %v225_v58 }
  0xe6   :  { %644 = vmatpush3.msra.mxu1 %v225_v58 }
  0xe7   :  { %646 = vmatmul.mubr.msk.f32.vlgmr.msra.gmra.mxu1 %vm261_vm2, %v234_v59 }
  0xe8   :  { %648 = vmatprep.mubr.msk.f32.mxu1 %vm261_vm2, %v235_v60 }
  0xeb   :  { %649 = vmatmul.mubr.msk.f32.gmra.mxu1 %vm261_vm2, %v236_v61 }
 0x1a7   :  { %v647_v0 = vpop.f32.mrf.mxu1 }
 0x1a8   :  { %v346_v7 = vadd.f32 %v647_v0, %v249_v5 }
 0x1a9   :  { %v340_v2 = vpop.f32.mrf.mxu1 }
 0x1aa   :  { %v341_v11 = vadd.f32 %v340_v2, %v244_v10  ;;  %v360_v13 = vmax.f32 %v346_v7, 0.0 }
 0x1ab   :  { %v650_v3 = vpop.f32.mrf.mxu1 }
 0x1ac   :  { %v356_v4 = vadd.f32 %v650_v3, %v259_v63  ;;  %v359_v14 = vmax.f32 %v341_v11, 0.0 }
 0x1ad   :  { %v350_v6 = vpop.f32.mrf.mxu1 }
 0x1ae   :  { %v362_v8 = vmax.f32 %v356_v4, 0.0  ;;  %v351_v9 = vadd.f32 %v350_v6, %v254_v1 }
 0x1b0   :  { %v361_v12 = vmax.f32 %v351_v9, 0.0  ;;  %651 = vmatprep.subr.mxu0 %v362_v8 }
 0x1b1   :  { %652 = vmatpush3.msra.mxu0 %v362_v8 }
 0x1b2   :  { %653 = vmatprep.subr.mxu0 %v361_v12 }
 0x1b3   :  { %654 = vmatpush3.msra.mxu0 %v361_v12 }
 0x1b4   :  { %655 = vmatprep.subr.mxu0 %v360_v13 }
 0x1b5   :  { %656 = vmatpush3.msra.mxu0 %v360_v13 }
 0x1b6   :  { %657 = vmatprep.subr.mxu0 %v359_v14 }
 0x1b7   :  { %658 = vmatpush3.msra.mxu0 %v359_v14 }
 0x1b8   :  { %660 = vmatmul.mubr.msk.f32.vlgmr.msra.gmra.mxu0 %vm377_vm3, %v364_v15  ;;  %662 = vmatprep.subr.mxu0 %v704_v16 }
 0x1b9   :  { %666 = vmatprep.mubr.msk.f32.mxu0 %vm705_vm4, %v704_v16 }
 0x278   :  { %v661_v18 = vpop.f32.mrf.mxu0 }
 0x279   :  { %v456_v19 = vadd.f32 %v661_v18, %v375_v17 }
 0x27a   :  { %v450_v21 = vpop.f32.mrf.mxu0 }
 0x27b   :  { %v460_v22 = vmax.f32 %v456_v19, 0.0  ;;  %v451_v23 = vadd.f32 %v450_v21, %v370_v20 }
 0x27d   :  { %v459_v24 = vmax.f32 %v451_v23, 0.0  ;;  %663 = vmatpush3.msra.mxu0 %v460_v22 }
 0x27e   :  { %664 = vmatprep.subr.mxu0 %v704_v16 }
 0x27f   :  { %665 = vmatpush3.msra.mxu0 %v459_v24 }
 0x280   :  { %667 = vmatmul.mubr.msk.f32.vlgmr.msra.gmra.mxu0 %vm468_vm5, %v461_v25 }
 0x340   :  { %v538_v27 = vpop.f32.mrf.mxu0 }
 0x341   :  { %v539_v28 = vadd.f32 %v538_v27, %v466_v26 }
 0x342   :  { %v668_v29 = vpop.f32.mrf.mxu0 }
 0x343   :  { %675 = vtanh.f32 %v539_v28  ;;  %v581_v30 = vmul.f32 -1.442695, %v539_v28 }
 0x345   :  { %677 = vpow2.f32 %v581_v30 }
 0x350   :  { %v676_v31 = vpop.eup %675 }
 0x351   :  { %543 = vst [vmem:[#allocation2] sm:$0x3] %v676_v31 }
 0x352   :  { %v678_v32 = vpop.eup %677 }
 0x353   :  { %v547_v33 = vadd.f32 1.0, %v678_v32 }
 0x355   :  { %679 = vrcp.f32 %v547_v33 }
 0x362   :  { %v680_v34 = vpop.eup %679 }
 0x363   :  { %550 = vst [vmem:[#allocation2] sm:$0x4] %v680_v34 }
 0x364   :  { %692 = shalt.err (!%p689_p4)
}
 0x365   :  { %560 = dma.vmem_to_hbm [thread:$0]  %s558_s22, 64, %s879_s9, [#allocation3]  }
 0x366   :  { %701 = dma.done.wait [#allocation3], 64  }
 0x367   :  { %702 = vsyncadd [#allocation3], 4294967232 }
 0x368   :  { %564 = vsyncpa [#allocation3], 1 }

</bundles_post_ra>
